<compile_context>
chip_gen: v5e
topology: v5e:2x2
jax: 0.10.0
libtpu: 0.0.40
codegen_flags: <defaults>
</compile_context>

<pallas_src>
import jax
import jax.numpy as jnp
from jax.experimental import pallas as pl
from jax.experimental.pallas import tpu as pltpu


_LANE = 128
_X_TILE_BUDGET_BYTES = 12 * 1024 * 1024    # per pipeline buffer (Pallas double-buffers)
_FLAT_W_BYTES_LIMIT = 4 * 1024 * 1024      # max replicated (T*D, O) weight in VMEM
_VMEM_LIMIT_BYTES = 48 * 1024 * 1024       # explicit scoped-VMEM limit (fits v7x 64 MiB)
_MEGACORE_MIN_X_BYTES = 4 * 1024 * 1024    # force >=2 batch grid steps above this (v7x)


def _round_up(v, m):
    return -(-v // m) * m


def _padded_tile_bytes_2d(rows, cols, dtype):
    """VMEM bytes of a (rows, cols) tile after (sublane, lane) layout padding."""
    itemsize = jnp.dtype(dtype).itemsize
    sublane = 8 * max(1, 4 // itemsize)     # bf16 packs 16 rows / vreg, int8 packs 32
    return _round_up(max(rows, 1), sublane) * _round_up(max(cols, 1), _LANE) * itemsize


# ----------------------------------------------------------------------------- kernels


def _flat_kernel(x_ref, w_ref, b_ref, o_ref):
    # x_ref: (TB, T*D) lane-dense; w_ref: (T*D, O) pre-scaled by 1/T; b_ref: (1, O) f32.
    o_ref[...] = (
        jnp.dot(x_ref[...], w_ref[...], preferred_element_type=jnp.float32) + b_ref[...]
    ).astype(o_ref.dtype)


def _reduce_first_kernel(x_ref, w_ref, b_ref, o_ref, acc_ref):
    # x_ref: (TB, TT, D); w_ref: (D, O) pre-scaled by 1/T; acc_ref: (TB, O) f32 scratch.
    t = pl.program_id(1)

    @pl.when(t == 0)
    def _():
        acc_ref[...] = jnp.zeros_like(acc_ref)

    # f32 accumulation for the temporal reduce (safe for bf16 inputs / large T).
    xs = jnp.sum(x_ref[...].astype(jnp.float32), axis=1)                  # (TB, D)
    acc_ref[...] += jnp.dot(xs, w_ref[...], preferred_element_type=jnp.float32)

    @pl.when(t == pl.num_programs(1) - 1)
    def _():
        o_ref[...] = (acc_ref[...] + b_ref[...]).astype(o_ref.dtype)


# ------------------------------------------------------------------------ tile sizing


def _choose_batch_block(B, slab8_bytes, budget):
    """Largest batch tile (multiple of 8, or full B) whose 8-row x slab fits the budget."""
    if B <= 8:
        return B
    groups = max(1, budget // max(slab8_bytes, 1))
    bb = min(_round_up(B, 8), int(groups) * 8)
    if bb >= B:
        return B
    return max(8, (bb // 8) * 8)


def _maybe_split_for_megacore(block_b, B, total_x_bytes):
    """Guarantee >= 2 batch grid steps when the input is big enough to matter (v7x)."""
    if block_b >= B and B > 8 and total_x_bytes > _MEGACORE_MIN_X_BYTES:
        half = _round_up(-(-B // 2), 8)
        if half < B:
            return half
    return block_b


def _choose_reduce_block_t(B, T, D, dtype, budget):
    """Largest T chunk that divides T exactly and is a multiple of 8 (or T itself),
    keeping a min(B,8)-row batch slab under the per-buffer VMEM budget."""
    candidates = sorted(
        set([T] + [tt for tt in range(8, T, 8) if T % tt == 0]), reverse=True
    )
    for tt in candidates:
        if min(B, 8) * _padded_tile_bytes_2d(tt, D, dtype) <= budget:
            return tt
    # TODO(synk): if even the smallest legal T chunk overflows the budget (enormous D),
    # a D-chunked reduction grid axis would be needed; fall back to the smallest chunk.
    return candidates[-1]


# ---------------------------------------------------------------------------- wrapper


def temporal_fc1_gap_ver2(x, conv_weight, conv_bias, *, block_b=None, block_t=None):
    """x: (B, T, D); conv_weight: (O, D, 1); conv_bias: (O,). Returns (B, O) float32."""
    B, T, D = x.shape
    O = conv_weight.shape[0]
    itemsize = jnp.dtype(x.dtype).itemsize

    # Fold the 1/T temporal-mean scale into the (reused) weight once.
    w_scaled = jnp.reshape(conv_weight, (O, D)).T * (1.0 / T)             # (D, O)
    bias2d = jnp.reshape(conv_bias, (1, O)).astype(jnp.float32)           # (1, O)

    K = T * D
    flat_w_bytes = _padded_tile_bytes_2d(K, O, x.dtype)
    flat_slab8_bytes = _padded_tile_bytes_2d(8, K, x.dtype)
    use_flat = (
        block_t is None
        and D < _LANE
        and flat_w_bytes <= _FLAT_W_BYTES_LIMIT
        and flat_slab8_bytes <= _X_TILE_BUDGET_BYTES
    )

    if use_flat:
        # Lane-dense formulation for D < 128: the MXU contraction over K = T*D does the
        # temporal mean for free; weight stays in x.dtype so bf16 takes the native path.
        x_flat = jnp.reshape(x, (B, K))
        w_flat = jnp.tile(w_scaled, (T, 1)).astype(x.dtype)               # (K, O)

        if block_b is None:
            block_b = _choose_batch_block(B, flat_slab8_bytes, _X_TILE_BUDGET_BYTES)
            total_x_bytes = -(-B // 8) * flat_slab8_bytes
            block_b = _maybe_split_for_megacore(block_b, B, total_x_bytes)

        grid = (pl.cdiv(B, block_b),)
        cost = pl.CostEstimate(
            flops=2 * B * K * O,
            transcendentals=0,
            bytes_accessed=B * K * itemsize + K * O * itemsize + B * O * 4 + O * 4,
        )
        return pl.pallas_call(
            _flat_kernel,
            out_shape=jax.ShapeDtypeStruct((B, O), jnp.float32),
            grid=grid,
            in_specs=[
                pl.BlockSpec((block_b, K), lambda i: (i, 0)),   # x tile, pipelined over B
                pl.BlockSpec((K, O), lambda i: (0, 0)),         # replicated scaled weight
                pl.BlockSpec((1, O), lambda i: (0, 0)),         # bias
            ],
            out_specs=pl.BlockSpec((block_b, O), lambda i: (i, 0)),
            compiler_params=pltpu.CompilerParams(
                dimension_semantics=("parallel",),              # megacore on v7x
                vmem_limit_bytes=_VMEM_LIMIT_BYTES,
            ),
            cost_estimate=cost,
        )(x_flat, w_flat, bias2d)

    # Fallback: reduce T first (f32), then a small (TB, D) @ (D, O) MXU dot, accumulated
    # over T chunks in an f32 VMEM scratch (handles D >= 128 and/or very large T*D).
    if block_t is None:
        block_t = _choose_reduce_block_t(B, T, D, x.dtype, _X_TILE_BUDGET_BYTES)
    if T % block_t != 0:
        block_t = T                    # reduction axis must divide exactly
    per_b_bytes = _padded_tile_bytes_2d(block_t, D, x.dtype)
    if block_b is None:
        block_b = _choose_batch_block(B, 8 * per_b_bytes, _X_TILE_BUDGET_BYTES)
        block_b = _maybe_split_for_megacore(
            block_b, B, B * _padded_tile_bytes_2d(T, D, x.dtype)
        )

    w_r = w_scaled.astype(jnp.float32)                                    # (D, O)
    grid = (pl.cdiv(B, block_b), T // block_t)
    cost = pl.CostEstimate(
        flops=2 * B * D * O * (T // block_t) + B * T * D,
        transcendentals=0,
        bytes_accessed=B * T * D * itemsize + D * O * 4 + B * O * 4 + O * 4,
    )
    return pl.pallas_call(
        _reduce_first_kernel,
        out_shape=jax.ShapeDtypeStruct((B, O), jnp.float32),
        grid=grid,
        in_specs=[
            pl.BlockSpec((block_b, block_t, D), lambda i, t: (i, t, 0)),  # x tile
            pl.BlockSpec((D, O), lambda i, t: (0, 0)),                    # scaled weight
            pl.BlockSpec((1, O), lambda i, t: (0, 0)),                    # bias
        ],
        out_specs=pl.BlockSpec((block_b, O), lambda i, t: (i, 0)),
        scratch_shapes=[pltpu.VMEM((block_b, O), jnp.float32)],
        compiler_params=pltpu.CompilerParams(
            dimension_semantics=("parallel", "arbitrary"),
            vmem_limit_bytes=_VMEM_LIMIT_BYTES,
        ),
        cost_estimate=cost,
    )(x, w_r, bias2d)


def _reference(x, conv_weight, conv_bias):
    """Pure-JAX reference of the PyTorch forward (conv1d k=1, then mean over T)."""
    O, D = conv_weight.shape[0], conv_weight.shape[1]
    w2d = jnp.reshape(conv_weight, (O, D))
    per_t = jnp.einsum("btd,od->bot", x, w2d) + conv_bias[None, :, None]  # (B, O, T)
    return jnp.mean(per_t, axis=2)                                        # (B, O)


if __name__ == "__main__":
    key = jax.random.PRNGKey(0)
    kx, kw, kb, kx2, kx3, kw3, kb3 = jax.random.split(key, 7)

    # Shapes consistent with the module: data_length=[24, 8] -> D=32,
    # class_length=[5, 11] -> O=16 (only_scene=False, only_action=False).
    B, T = 2, 8
    D, O = 32, 16
    x = jax.random.normal(kx, (B, T, D), dtype=jnp.float32)
    bound = 1.0 / (D ** 0.5)
    conv_weight = jax.random.uniform(kw, (O, D, 1), minval=-bound, maxval=bound,
                                     dtype=jnp.float32)
    conv_bias = jax.random.uniform(kb, (O,), minval=-bound, maxval=bound,
                                   dtype=jnp.float32)

    # 1) Demo shapes -> flat lane-dense path, single grid step.
    out = jax.block_until_ready(temporal_fc1_gap_ver2(x, conv_weight, conv_bias))
    ref = _reference(x, conv_weight, conv_bias)
    assert out.shape == (B, O), out.shape
    assert jnp.allclose(out, ref, atol=1e-5, rtol=1e-5), float(jnp.max(jnp.abs(out - ref)))

    # 2) Larger batch with a forced small batch tile -> flat path, 4-step pipelined grid.
    B2 = 32
    x2 = jax.random.normal(kx2, (B2, T, D), dtype=jnp.float32)
    out2 = jax.block_until_ready(
        temporal_fc1_gap_ver2(x2, conv_weight, conv_bias, block_b=8)
    )
    ref2 = _reference(x2, conv_weight, conv_bias)
    assert out2.shape == (B2, O), out2.shape
    assert jnp.allclose(out2, ref2, atol=1e-5, rtol=1e-5), float(jnp.max(jnp.abs(out2 - ref2)))

    # 3) Wide-D case (D >= 128) with a forced T chunk -> reduce-first path exercising the
    #    f32 VMEM accumulator + pl.when init/finalize over a 2-step reduction grid axis.
    B3, T3, D3, O3 = 8, 16, 256, 24
    x3 = jax.random.normal(kx3, (B3, T3, D3), dtype=jnp.float32)
    bound3 = 1.0 / (D3 ** 0.5)
    conv_weight3 = jax.random.uniform(kw3, (O3, D3, 1), minval=-bound3, maxval=bound3,
                                      dtype=jnp.float32)
    conv_bias3 = jax.random.uniform(kb3, (O3,), minval=-bound3, maxval=bound3,
                                    dtype=jnp.float32)
    out3 = jax.block_until_ready(
        temporal_fc1_gap_ver2(x3, conv_weight3, conv_bias3, block_t=8)
    )
    ref3 = _reference(x3, conv_weight3, conv_bias3)
    assert out3.shape == (B3, O3), out3.shape
    assert jnp.allclose(out3, ref3, atol=1e-4, rtol=1e-4), float(jnp.max(jnp.abs(out3 - ref3)))

    print("KERNEL_OK")
</pallas_src>

<mosaic_0001>
module attributes {stable_mosaic.version = 11 : i64} {
  func.func @_flat_kernel(%arg0: i32, %arg1: memref<2x256xf32, #tpu.memory_space<vmem>>, %arg2: memref<256x16xf32, #tpu.memory_space<vmem>>, %arg3: memref<1x16xf32, #tpu.memory_space<vmem>>, %arg4: memref<2x16xf32, #tpu.memory_space<vmem>>) attributes {dimension_semantics = [#tpu.dimension_semantics<parallel>], iteration_bounds = array<i64: 1>, scalar_prefetch = 0 : i64, scratch_operands = 0 : i64, tpu.core_type = #tpu.core_type<tc>, window_params = [{transform_indices = @transform_0, window_bounds = array<i64: 2, 256>}, {pipeline_mode = #tpu.pipeline_mode<synchronous>, transform_indices = @transform_1, window_bounds = array<i64: 256, 16>}, {pipeline_mode = #tpu.pipeline_mode<synchronous>, transform_indices = @transform_2, window_bounds = array<i64: 1, 16>}, {transform_indices = @transform_3, window_bounds = array<i64: 2, 16>}]} {
    %c0 = arith.constant 0 : index
    %c0_0 = arith.constant 0 : index
    %0 = vector.load %arg1[%c0, %c0_0] : memref<2x256xf32, #tpu.memory_space<vmem>>, vector<2x256xf32>
    %c0_1 = arith.constant 0 : index
    %c0_2 = arith.constant 0 : index
    %1 = vector.load %arg2[%c0_1, %c0_2] : memref<256x16xf32, #tpu.memory_space<vmem>>, vector<256x16xf32>
    %cst = arith.constant dense<0.000000e+00> : vector<2x16xf32>
    %2 = tpu.matmul %0, %1, %cst {dimension_numbers = #tpu.dot_dimension_numbers<[1], [0], [0], [1], [0, 0, 1, 1], [], []>} : vector<2x256xf32>, vector<256x16xf32>, vector<2x16xf32> -> vector<2x16xf32>
    %c0_3 = arith.constant 0 : index
    %c0_4 = arith.constant 0 : index
    %3 = vector.load %arg3[%c0_3, %c0_4] : memref<1x16xf32, #tpu.memory_space<vmem>>, vector<1x16xf32>
    %4 = vector.broadcast %3 : vector<1x16xf32> to vector<2x16xf32>
    %5 = arith.addf %2, %4 : vector<2x16xf32>
    %c0_5 = arith.constant 0 : index
    %c0_6 = arith.constant 0 : index
    %6 = vector.load %arg4[%c0_5, %c0_6] : memref<2x16xf32, #tpu.memory_space<vmem>>, vector<2x16xf32>
    tpu.vector_store %arg4[%c0_5, %c0_6], %5 {strides = array<i32>} : memref<2x16xf32, #tpu.memory_space<vmem>>, vector<2x16xf32>,
    return
  }
  func.func @transform_0(%arg0: i32) -> (i32, i32) {
    %c0_i32 = arith.constant 0 : i32
    %c0_i32_0 = arith.constant 0 : i32
    return %arg0, %c0_i32 : i32, i32
  }
  func.func @transform_1(%arg0: i32) -> (i32, i32) {
    %c0_i32 = arith.constant 0 : i32
    %c0_i32_0 = arith.constant 0 : i32
    %c0_i32_1 = arith.constant 0 : i32
    return %c0_i32, %c0_i32_0 : i32, i32
  }
  func.func @transform_2(%arg0: i32) -> (i32, i32) {
    %c0_i32 = arith.constant 0 : i32
    %c0_i32_0 = arith.constant 0 : i32
    %c0_i32_1 = arith.constant 0 : i32
    return %c0_i32, %c0_i32_0 : i32, i32
  }
  func.func @transform_3(%arg0: i32) -> (i32, i32) {
    %c0_i32 = arith.constant 0 : i32
    %c0_i32_0 = arith.constant 0 : i32
    return %arg0, %c0_i32 : i32, i32
  }
}

</mosaic_0001>

<bundles_post_ra>
// kernel: tpu_custom_call.1
= control target key start
LH: loop header
LB: loop body
LE: loop exit
PB: predicated region body
PF: predicated region fallthrough
CT: control target
= control target key end

     0   :  { %s270_s0 = inlined_call_operand.vmem [shape: f32[2,256], index: 0, kind: input, shape index: {}]   ;;  %s271_s1 = inlined_call_operand.vmem [shape: f32[256,16], index: 1, kind: input, shape index: {}]   ;;  %s272_s2 = inlined_call_operand.vmem [shape: f32[1,16], index: 2, kind: input, shape index: {}]   ;;  %s273_s3 = inlined_call_operand.hbm [shape: f32[2,16], index: 3, kind: output, shape index: {}]  }
   0x1   :  { %v31_v0 = vld [vmem:[%s271_s1 + $0x78] sm:$0xff]  ;;  %v30_v1 = vld [vmem:[%s271_s1 + $0x70] sm:$0xff]  ;;  %v29_v4 = vld [vmem:[%s271_s1 + $0x68] sm:$0xff] }
   0x2   :  { %v47_v2 = vld [vmem:[%s271_s1 + $0xf8] sm:$0xff]  ;;  %58 = vmatpush.msra.mxu0 %v31_v0  ;;  %v46_v3 = vld [vmem:[%s271_s1 + $0xf0] sm:$0xff]  ;;  %v45_v5 = vld [vmem:[%s271_s1 + $0xe8] sm:$0xff] }
   0x3   :  { %78 = vmatpush.msra.mxu1 %v47_v2  ;;  %v28_v6 = vld [vmem:[%s271_s1 + $0x60] sm:$0xff]  ;;  %v27_v8 = vld [vmem:[%s271_s1 + $0x58] sm:$0xff]  ;;  %v26_v10 = vld [vmem:[%s271_s1 + $0x50] sm:$0xff] }
   0x4   :  { %59 = vmatpush.msra.mxu0 %v30_v1  ;;  %v44_v7 = vld [vmem:[%s271_s1 + $0xe0] sm:$0xff]  ;;  %v43_v9 = vld [vmem:[%s271_s1 + $0xd8] sm:$0xff]  ;;  %v42_v11 = vld [vmem:[%s271_s1 + $0xd0] sm:$0xff] }
   0x5   :  { %79 = vmatpush.msra.mxu1 %v46_v3  ;;  %v25_v12 = vld [vmem:[%s271_s1 + $0x48] sm:$0xff]  ;;  %v15_v14 = vld [vmem:[%s270_s0] sm:$0xf] }
   0x6   :  { %60 = vmatpush.msra.mxu0 %v29_v4  ;;  %v41_v13 = vld [vmem:[%s271_s1 + $0xc8] sm:$0xff]  ;;  %53 = vst [vmem:[#allocation1] ss:$4 sm:$0xff] %v15_v14  ;;  %v24_v15 = vld [vmem:[%s271_s1 + $0x40] sm:$0xff] }
   0x7   :  { %80 = vmatpush.msra.mxu1 %v45_v5  ;;  %v40_v16 = vld [vmem:[%s271_s1 + $0xc0] sm:$0xff] }
   0x8   :  { %61 = vmatpush.msra.mxu0 %v28_v6 }
   0x9   :  { %81 = vmatpush.msra.mxu1 %v44_v7 }
   0xa   :  { %62 = vmatpush.msra.mxu0 %v27_v8 }
   0xb   :  { %82 = vmatpush.msra.mxu1 %v43_v9 }
   0xc   :  { %63 = vmatpush.msra.mxu0 %v26_v10 }
   0xd   :  { %83 = vmatpush.msra.mxu1 %v42_v11 }
   0xe   :  { %8 = vsyncpa [#allocation3], 0  ;;  %64 = vmatpush.msra.mxu0 %v25_v12  ;;  %v23_v17 = vld [vmem:[%s271_s1 + $0x38] sm:$0xff]  ;;  %v22_v19 = vld [vmem:[%s271_s1 + $0x30] sm:$0xff]  ;;  %s144_s24 = smov [#allocation2]   ;;  %vm98_vm0 = vcmask 123904  }
   0xf   :  { %84 = vmatpush.msra.mxu1 %v41_v13  ;;  %v39_v18 = vld [vmem:[%s271_s1 + $0xb8] sm:$0xff]  ;;  %v38_v20 = vld [vmem:[%s271_s1 + $0xb0] sm:$0xff]  ;;  %v21_v21 = vld [vmem:[%s271_s1 + $0x28] sm:$0xff]  ;;  %s105_s25 = sshll.u32 %s144_s24, 4  ;;  %s106_s25 = int_to_ptr.vmem [resolvable:$true] %s105_s25 }
  0x10   :  { %65 = vmatpush.msra.mxu0 %v24_v15  ;;  %v37_v22 = vld [vmem:[%s271_s1 + $0xa8] sm:$0xff]  ;;  %v20_v23 = vld [vmem:[%s271_s1 + $0x20] sm:$0xff]  ;;  %v19_v25 = vld [vmem:[%s271_s1 + $0x18] sm:$0xff] }
  0x11   :  { %85 = vmatpush.msra.mxu1 %v40_v16  ;;  %v36_v24 = vld [vmem:[%s271_s1 + $0xa0] sm:$0xff]  ;;  %v35_v26 = vld [vmem:[%s271_s1 + $0x98] sm:$0xff]  ;;  %v18_v27 = vld [vmem:[%s271_s1 + $0x10] sm:$0xff] }
  0x12   :  { %66 = vmatpush.msra.mxu0 %v23_v17  ;;  %v34_v28 = vld [vmem:[%s271_s1 + $0x90] sm:$0xff]  ;;  %v17_v29 = vld [vmem:[%s271_s1 + $0x8] sm:$0xff]  ;;  %v16_v31 = vld [vmem:[%s271_s1] sm:$0xff] }
  0x13   :  { %86 = vmatpush.msra.mxu1 %v39_v18  ;;  %v33_v30 = vld [vmem:[%s271_s1 + $0x88] sm:$0xff]  ;;  %v32_v32 = vld [vmem:[%s271_s1 + $0x80] sm:$0xff]  ;;  %s107_s1 = sshll.u32 %s273_s3, 4  ;;  %s108_s1 = int_to_ptr.hbm [resolvable:$true] %s107_s1 }
  0x14   :  { %67 = vmatpush.msra.mxu0 %v22_v19  ;;  %v54_v33 = vld.sshfl [vmem:[#allocation1] sm:$0xff pattern:$0x73625140]  ;;  %v55_v34 = vld.sshfl [vmem:[#allocation1 + $0x8] sm:$0xff pattern:$0x73625140] }
  0x15   :  { %87 = vmatpush.msra.mxu1 %v38_v20  ;;  %v117_v35 = vld [vmem:[%s272_s2] ss:$0 sm:$0xff] }
  0x16   :  { %68 = vmatpush.msra.mxu0 %v21_v21 }
  0x17   :  { %88 = vmatpush.msra.mxu1 %v37_v22 }
  0x18   :  { %69 = vmatpush.msra.mxu0 %v20_v23 }
  0x19   :  { %89 = vmatpush.msra.mxu1 %v36_v24 }
  0x1a   :  { %70 = vmatpush.msra.mxu0 %v19_v25 }
  0x1b   :  { %90 = vmatpush.msra.mxu1 %v35_v26 }
  0x1c   :  { %71 = vmatpush.msra.mxu0 %v18_v27 }
  0x1d   :  { %91 = vmatpush.msra.mxu1 %v34_v28 }
  0x1e   :  { %72 = vmatpush.msra.mxu0 %v17_v29 }
  0x1f   :  { %92 = vmatpush.msra.mxu1 %v33_v30 }
  0x20   :  { %73 = vmatpush.msra.mxu0 %v16_v31 }
  0x21   :  { %93 = vmatpush.msra.mxu1 %v32_v32  ;;  %74 = vmatmul.f32.vlgmr.msra.gmra.mxu0 %v54_v33 }
  0x22   :  { %94 = vmatmul.f32.vlgmr.msra.gmra.mxu1 %v55_v34 }
  0x9e   :  { %v75_v36 = vpop.f32.mrf.mxu0 }
  0x9f   :  { %v95_v37 = vpop.f32.mrf.mxu1  ;;  %v76_v38 = vadd.f32 %v117_v35, %v75_v36 }
  0xa1   :  { %v96_v39 = vadd.f32 %v95_v37, %v76_v38 }
  0xa3   :  { %99 = vst.msk [vmem:[#allocation2] sm:$0x3] %vm98_vm0, %v96_v39 }
  0xa4   :  { %110 = dma.vmem_to_hbm [thread:$0]  %s106_s25, 32, %s108_s1, [#allocation3]  }
  0xa5   :  { %142 = dma.done.wait [#allocation3], 32  }
  0xa6   :  { %143 = vsyncadd [#allocation3], 4294967264 }
  0xa7   :  { %115 = vsyncpa [#allocation3], 1 }

</bundles_post_ra>
